<compile_context>
chip_gen: v5e
topology: v5e:2x2
jax: 0.10.0
libtpu: 0.0.40
codegen_flags: <defaults>
</compile_context>

<pallas_src>
from functools import partial

import jax
import jax.numpy as jnp
from jax.experimental import pallas as pl
from jax.experimental.pallas import tpu as pltpu


def _projector_kernel(x_ref, gamma_ref, w_ref, o_ref, normed_ref, *,
                      rt, t, k, h, inv_kk, eps):
    # x_ref:      (1, rt*k, T, k*H)  native-layout patch-row slab
    # gamma_ref:  (1, H) f32, already holds (1 + gamma)
    # w_ref:      (H, D)  model dtype, VMEM-resident (constant index_map)
    # o_ref:      (1, TM, D)  with TM = rt*T
    # normed_ref: (TM, H) model-dtype scratch (pooled + RMS-normed tokens)
    gamma = gamma_ref[...]                                    # (1, H) f32
    for r in range(rt):                                       # token rows in tile
        base = r * k
        # AvgPool2d(k, stride=k): sum k*k contiguous (T, H) lane-chunk slices
        # in f32 on the VPU, scale by 1/kk once.
        acc = x_ref[0, base, :, 0:h].astype(jnp.float32)
        for ky in range(k):
            for kx in range(k):
                if ky == 0 and kx == 0:
                    continue
                acc = acc + x_ref[0, base + ky, :,
                                  kx * h:(kx + 1) * h].astype(jnp.float32)
        pooled = acc * inv_kk                                  # (T, H) f32

        # GemmaRMSNorm in f32: x * rsqrt(mean(x^2) + eps) * (1 + gamma), type_as(x)
        ms = jnp.mean(pooled * pooled, axis=-1, keepdims=True)
        normed = pooled * jax.lax.rsqrt(ms + eps) * gamma
        normed_ref[pl.ds(r * t, t), :] = normed.astype(normed_ref.dtype)

    # One MXU matmul per token tile: native-dtype operands, f32 accumulation.
    o_ref[0] = jnp.dot(normed_ref[...], w_ref[...],
                       preferred_element_type=jnp.float32).astype(o_ref.dtype)


def _vmem_capacity_bytes():
    try:
        return int(pltpu.get_tpu_info().vmem_capacity_bytes)
    except Exception:
        return 64 * 1024 * 1024       # conservative default (v7x per-core VMEM)


def _resident_weight_spec(H, D):
    idx = lambda b, t: (0, 0)
    try:
        # Constant index_map => fetched once; Buffered(1) avoids a useless
        # second VMEM buffer for the resident weight (matters on v7x: 64 MiB).
        return pl.BlockSpec((H, D), idx, pipeline_mode=pl.Buffered(1))
    except Exception:
        return pl.BlockSpec((H, D), idx)


def gemma3_mm_projector(vision_outputs, proj_weight, norm_weight, *,
                        patches_per_image, tokens_per_side, rms_norm_eps,
                        token_rows_per_tile=None):
    B, S, H = vision_outputs.shape
    P = patches_per_image
    T = tokens_per_side
    assert S == P * P, "seq_length must equal patches_per_image**2"
    assert P % T == 0, "patches_per_image must be divisible by tokens_per_side"
    k = P // T
    kk = k * k
    tokens = T * T
    D = proj_weight.shape[1]
    assert proj_weight.shape[0] == H and norm_weight.shape == (H,)

    x_item = jnp.dtype(vision_outputs.dtype).itemsize
    w_item = jnp.dtype(proj_weight.dtype).itemsize
    o_item = x_item
    vmem_cap = _vmem_capacity_bytes()

    def working_set(rt):
        tm = rt * T
        x_blk = rt * kk * T * H * x_item * 2      # double-buffered activation slab
        w_blk = H * D * w_item                    # resident weight, single buffer
        g_blk = H * 4 * 2                         # (1 + gamma) f32
        o_blk = tm * D * o_item * 2               # double-buffered output tile
        s_blk = tm * H * x_item                   # normed scratch
        return x_blk + w_blk + g_blk + o_blk + s_blk

    if token_rows_per_tile is None:
        budget = int(vmem_cap * 0.7)
        cands = [rt for rt in range(1, T + 1)
                 if T % rt == 0 and ((rt * T) % 8 == 0 or rt == T)]
        fits = [rt for rt in cands if working_set(rt) <= budget]
        rt = max(fits) if fits else min(cands)
    else:
        rt = int(token_rows_per_tile)
        assert T % rt == 0 and ((rt * T) % 8 == 0 or rt == T), \
            "token_rows_per_tile must divide T and give an 8-aligned (or full) tile"
    TM = rt * T

    # Free (row-major) reshape -- NO transpose, no extra HBM pass:
    #   (B, P*P, H) -> (B, P, T, k*H), since px = tx*k + kx folds into lanes.
    x = vision_outputs.reshape(B, P, T, k * H)

    # Hoist (1 + gamma) out of the kernel, keep it in f32.
    gamma_plus1 = (1.0 + norm_weight.astype(jnp.float32)).reshape(1, H)

    ws = working_set(rt)
    vmem_limit = int(min(vmem_cap - (2 << 20), max(ws + (8 << 20), 32 << 20)))

    kernel = partial(_projector_kernel, rt=rt, t=T, k=k, h=H,
                     inv_kk=1.0 / kk, eps=rms_norm_eps)
    return pl.pallas_call(
        kernel,
        out_shape=jax.ShapeDtypeStruct((B, tokens, D), vision_outputs.dtype),
        grid_spec=pltpu.PrefetchScalarGridSpec(
            num_scalar_prefetch=0,
            grid=(B, tokens // TM),
            in_specs=[
                pl.BlockSpec((1, rt * k, T, k * H), lambda b, t: (b, t, 0, 0)),
                pl.BlockSpec((1, H), lambda b, t: (0, 0)),
                _resident_weight_spec(H, D),
            ],
            out_specs=pl.BlockSpec((1, TM, D), lambda b, t: (b, t, 0)),
            scratch_shapes=[pltpu.VMEM((TM, H), vision_outputs.dtype)],
        ),
        compiler_params=pltpu.CompilerParams(
            dimension_semantics=("parallel", "parallel"),
            vmem_limit_bytes=vmem_limit),
    )(x, gamma_plus1, proj_weight)


def _reference(vision_outputs, proj_w, norm_w, P, T, eps):
    """Pure-JAX mirror of the PyTorch forward."""
    B, S, H = vision_outputs.shape
    k = P // T
    r = vision_outputs.transpose(0, 2, 1).reshape(B, H, P, P)
    pooled = r.reshape(B, H, T, k, T, k).astype(jnp.float32).mean(axis=(3, 5))
    pooled = pooled.reshape(B, H, T * T).transpose(0, 2, 1)
    ms = jnp.mean(pooled * pooled, axis=-1, keepdims=True)
    normed = pooled * jax.lax.rsqrt(ms + eps) * (1.0 + norm_w.astype(jnp.float32))
    normed = normed.astype(vision_outputs.dtype)
    out = jnp.dot(normed, proj_w, preferred_element_type=jnp.float32)
    return out.astype(vision_outputs.dtype)


if __name__ == "__main__":
    key = jax.random.PRNGKey(0)
    eps = 1e-6

    # ---- Test 1: small f32 "config" ------------------------------------
    #   vision_hidden=32, text_hidden=64, P=8, T=4 -> k=2, kk=4, tokens=16
    B, Hv, Dt = 2, 32, 64
    P, T = 8, 4
    S = P * P
    k1, k2, k3 = jax.random.split(key, 3)
    vis = jax.random.normal(k1, (B, S, Hv), dtype=jnp.float32)
    proj_w = 0.02 * jax.random.normal(k2, (Hv, Dt), dtype=jnp.float32)
    norm_w = 0.10 * jax.random.normal(k3, (Hv,), dtype=jnp.float32)

    out = gemma3_mm_projector(vis, proj_w, norm_w,
                              patches_per_image=P, tokens_per_side=T,
                              rms_norm_eps=eps)
    out = jax.block_until_ready(out)
    ref = _reference(vis, proj_w, norm_w, P, T, eps)
    assert out.shape == (B, T * T, Dt)
    assert jnp.allclose(out, ref, atol=1e-4, rtol=1e-4)

    # ---- Test 2: bf16, force token tiling (2 grid steps over tokens) ----
    #   H=128, D=256, P=8, T=4; token_rows_per_tile=2 -> TM=8, grid (1, 2)
    B2, Hv2, Dt2 = 1, 128, 256
    P2, T2 = 8, 4
    S2 = P2 * P2
    k4, k5, k6 = jax.random.split(jax.random.PRNGKey(1), 3)
    vis2 = jax.random.normal(k4, (B2, S2, Hv2), dtype=jnp.float32).astype(jnp.bfloat16)
    proj_w2 = (0.02 * jax.random.normal(k5, (Hv2, Dt2), dtype=jnp.float32)).astype(jnp.bfloat16)
    norm_w2 = (0.10 * jax.random.normal(k6, (Hv2,), dtype=jnp.float32)).astype(jnp.bfloat16)

    out2 = gemma3_mm_projector(vis2, proj_w2, norm_w2,
                               patches_per_image=P2, tokens_per_side=T2,
                               rms_norm_eps=eps, token_rows_per_tile=2)
    out2 = jax.block_until_ready(out2)
    ref2 = _reference(vis2, proj_w2, norm_w2, P2, T2, eps)
    assert out2.shape == (B2, T2 * T2, Dt2)
    assert out2.dtype == jnp.bfloat16
    assert jnp.allclose(out2.astype(jnp.float32), ref2.astype(jnp.float32),
                        atol=3e-2, rtol=3e-2)

    print("KERNEL_OK")
</pallas_src>

<mosaic_0001>
module attributes {stable_mosaic.version = 11 : i64} {
  func.func @_projector_kernel(%arg0: i32, %arg1: i32, %arg2: memref<1x8x4x64xf32, #tpu.memory_space<vmem>>, %arg3: memref<1x32xf32, #tpu.memory_space<vmem>>, %arg4: memref<32x64xf32, #tpu.memory_space<vmem>>, %arg5: memref<1x16x64xf32, #tpu.memory_space<vmem>>, %arg6: memref<16x32xf32, #tpu.memory_space<vmem>>) attributes {dimension_semantics = [#tpu.dimension_semantics<parallel>, #tpu.dimension_semantics<parallel>], iteration_bounds = array<i64: 2, 1>, scalar_prefetch = 0 : i64, scratch_operands = 1 : i64, tpu.core_type = #tpu.core_type<tc>, window_params = [{transform_indices = @transform_0, window_bounds = array<i64: 1, 8, 4, 64>}, {pipeline_mode = #tpu.pipeline_mode<synchronous>, transform_indices = @transform_1, window_bounds = array<i64: 1, 32>}, {pipeline_mode = #tpu.pipeline_mode<synchronous>, transform_indices = @transform_2, window_bounds = array<i64: 32, 64>}, {transform_indices = @transform_3, window_bounds = array<i64: 1, 16, 64>}]} {
    %c0 = arith.constant 0 : index
    %c0_0 = arith.constant 0 : index
    %0 = vector.load %arg3[%c0, %c0_0] : memref<1x32xf32, #tpu.memory_space<vmem>>, vector<1x32xf32>
    %c0_1 = arith.constant 0 : index
    %c0_2 = arith.constant 0 : index
    %c0_3 = arith.constant 0 : index
    %c0_4 = arith.constant 0 : index
    %1 = vector.load %arg2[%c0_1, %c0_2, %c0_3, %c0_4] : memref<1x8x4x64xf32, #tpu.memory_space<vmem>>, vector<1x1x4x32xf32>
    %2 = vector.shape_cast %1 : vector<1x1x4x32xf32> to vector<4x32xf32>
    %c0_5 = arith.constant 0 : index
    %c0_6 = arith.constant 0 : index
    %c0_7 = arith.constant 0 : index
    %c32 = arith.constant 32 : index
    %3 = vector.load %arg2[%c0_5, %c0_6, %c0_7, %c32] : memref<1x8x4x64xf32, #tpu.memory_space<vmem>>, vector<1x1x4x32xf32>
    %4 = vector.shape_cast %3 : vector<1x1x4x32xf32> to vector<4x32xf32>
    %5 = arith.addf %2, %4 : vector<4x32xf32>
    %c0_8 = arith.constant 0 : index
    %c1 = arith.constant 1 : index
    %c0_9 = arith.constant 0 : index
    %c0_10 = arith.constant 0 : index
    %6 = vector.load %arg2[%c0_8, %c1, %c0_9, %c0_10] : memref<1x8x4x64xf32, #tpu.memory_space<vmem>>, vector<1x1x4x32xf32>
    %7 = vector.shape_cast %6 : vector<1x1x4x32xf32> to vector<4x32xf32>
    %8 = arith.addf %5, %7 : vector<4x32xf32>
    %c0_11 = arith.constant 0 : index
    %c1_12 = arith.constant 1 : index
    %c0_13 = arith.constant 0 : index
    %c32_14 = arith.constant 32 : index
    %9 = vector.load %arg2[%c0_11, %c1_12, %c0_13, %c32_14] : memref<1x8x4x64xf32, #tpu.memory_space<vmem>>, vector<1x1x4x32xf32>
    %10 = vector.shape_cast %9 : vector<1x1x4x32xf32> to vector<4x32xf32>
    %11 = arith.addf %8, %10 : vector<4x32xf32>
    %cst = arith.constant 2.500000e-01 : f32
    %12 = vector.broadcast %cst : f32 to vector<4x32xf32>
    %13 = arith.mulf %11, %12 : vector<4x32xf32>
    %14 = arith.mulf %13, %13 : vector<4x32xf32>
    %cst_15 = arith.constant dense<0.000000e+00> : vector<4xf32>
    %15 = vector.multi_reduction <add>, %14, %cst_15 [1] : vector<4x32xf32> to vector<4xf32>
    %16 = vector.shape_cast %15 : vector<4xf32> to vector<4x1xf32>
    %cst_16 = arith.constant 3.200000e+01 : f32
    %17 = vector.broadcast %cst_16 : f32 to vector<4x1xf32>
    %18 = arith.divf %16, %17 : vector<4x1xf32>
    %cst_17 = arith.constant 9.99999997E-7 : f32
    %19 = vector.broadcast %cst_17 : f32 to vector<4x1xf32>
    %20 = arith.addf %18, %19 : vector<4x1xf32>
    %21 = math.rsqrt %20 : vector<4x1xf32>
    %22 = vector.broadcast %21 : vector<4x1xf32> to vector<4x32xf32>
    %23 = arith.mulf %13, %22 : vector<4x32xf32>
    %24 = vector.broadcast %0 : vector<1x32xf32> to vector<4x32xf32>
    %25 = arith.mulf %23, %24 : vector<4x32xf32>
    %c0_18 = arith.constant 0 : index
    %c0_19 = arith.constant 0 : index
    %26 = vector.load %arg6[%c0_18, %c0_19] : memref<16x32xf32, #tpu.memory_space<vmem>>, vector<4x32xf32>
    tpu.vector_store %arg6[%c0_18, %c0_19], %25 {strides = array<i32>} : memref<16x32xf32, #tpu.memory_space<vmem>>, vector<4x32xf32>,
    %c0_20 = arith.constant 0 : index
    %c2 = arith.constant 2 : index
    %c0_21 = arith.constant 0 : index
    %c0_22 = arith.constant 0 : index
    %27 = vector.load %arg2[%c0_20, %c2, %c0_21, %c0_22] : memref<1x8x4x64xf32, #tpu.memory_space<vmem>>, vector<1x1x4x32xf32>
    %28 = vector.shape_cast %27 : vector<1x1x4x32xf32> to vector<4x32xf32>
    %c0_23 = arith.constant 0 : index
    %c2_24 = arith.constant 2 : index
    %c0_25 = arith.constant 0 : index
    %c32_26 = arith.constant 32 : index
    %29 = vector.load %arg2[%c0_23, %c2_24, %c0_25, %c32_26] : memref<1x8x4x64xf32, #tpu.memory_space<vmem>>, vector<1x1x4x32xf32>
    %30 = vector.shape_cast %29 : vector<1x1x4x32xf32> to vector<4x32xf32>
    %31 = arith.addf %28, %30 : vector<4x32xf32>
    %c0_27 = arith.constant 0 : index
    %c3 = arith.constant 3 : index
    %c0_28 = arith.constant 0 : index
    %c0_29 = arith.constant 0 : index
    %32 = vector.load %arg2[%c0_27, %c3, %c0_28, %c0_29] : memref<1x8x4x64xf32, #tpu.memory_space<vmem>>, vector<1x1x4x32xf32>
    %33 = vector.shape_cast %32 : vector<1x1x4x32xf32> to vector<4x32xf32>
    %34 = arith.addf %31, %33 : vector<4x32xf32>
    %c0_30 = arith.constant 0 : index
    %c3_31 = arith.constant 3 : index
    %c0_32 = arith.constant 0 : index
    %c32_33 = arith.constant 32 : index
    %35 = vector.load %arg2[%c0_30, %c3_31, %c0_32, %c32_33] : memref<1x8x4x64xf32, #tpu.memory_space<vmem>>, vector<1x1x4x32xf32>
    %36 = vector.shape_cast %35 : vector<1x1x4x32xf32> to vector<4x32xf32>
    %37 = arith.addf %34, %36 : vector<4x32xf32>
    %cst_34 = arith.constant 2.500000e-01 : f32
    %38 = vector.broadcast %cst_34 : f32 to vector<4x32xf32>
    %39 = arith.mulf %37, %38 : vector<4x32xf32>
    %40 = arith.mulf %39, %39 : vector<4x32xf32>
    %cst_35 = arith.constant dense<0.000000e+00> : vector<4xf32>
    %41 = vector.multi_reduction <add>, %40, %cst_35 [1] : vector<4x32xf32> to vector<4xf32>
    %42 = vector.shape_cast %41 : vector<4xf32> to vector<4x1xf32>
    %cst_36 = arith.constant 3.200000e+01 : f32
    %43 = vector.broadcast %cst_36 : f32 to vector<4x1xf32>
    %44 = arith.divf %42, %43 : vector<4x1xf32>
    %cst_37 = arith.constant 9.99999997E-7 : f32
    %45 = vector.broadcast %cst_37 : f32 to vector<4x1xf32>
    %46 = arith.addf %44, %45 : vector<4x1xf32>
    %47 = math.rsqrt %46 : vector<4x1xf32>
    %48 = vector.broadcast %47 : vector<4x1xf32> to vector<4x32xf32>
    %49 = arith.mulf %39, %48 : vector<4x32xf32>
    %50 = vector.broadcast %0 : vector<1x32xf32> to vector<4x32xf32>
    %51 = arith.mulf %49, %50 : vector<4x32xf32>
    %c4 = arith.constant 4 : index
    %c0_38 = arith.constant 0 : index
    %52 = vector.load %arg6[%c4, %c0_38] : memref<16x32xf32, #tpu.memory_space<vmem>>, vector<4x32xf32>
    tpu.vector_store %arg6[%c4, %c0_38], %51 {strides = array<i32>} : memref<16x32xf32, #tpu.memory_space<vmem>>, vector<4x32xf32>,
    %c0_39 = arith.constant 0 : index
    %c4_40 = arith.constant 4 : index
    %c0_41 = arith.constant 0 : index
    %c0_42 = arith.constant 0 : index
    %53 = vector.load %arg2[%c0_39, %c4_40, %c0_41, %c0_42] : memref<1x8x4x64xf32, #tpu.memory_space<vmem>>, vector<1x1x4x32xf32>
    %54 = vector.shape_cast %53 : vector<1x1x4x32xf32> to vector<4x32xf32>
    %c0_43 = arith.constant 0 : index
    %c4_44 = arith.constant 4 : index
    %c0_45 = arith.constant 0 : index
    %c32_46 = arith.constant 32 : index
    %55 = vector.load %arg2[%c0_43, %c4_44, %c0_45, %c32_46] : memref<1x8x4x64xf32, #tpu.memory_space<vmem>>, vector<1x1x4x32xf32>
    %56 = vector.shape_cast %55 : vector<1x1x4x32xf32> to vector<4x32xf32>
    %57 = arith.addf %54, %56 : vector<4x32xf32>
    %c0_47 = arith.constant 0 : index
    %c5 = arith.constant 5 : index
    %c0_48 = arith.constant 0 : index
    %c0_49 = arith.constant 0 : index
    %58 = vector.load %arg2[%c0_47, %c5, %c0_48, %c0_49] : memref<1x8x4x64xf32, #tpu.memory_space<vmem>>, vector<1x1x4x32xf32>
    %59 = vector.shape_cast %58 : vector<1x1x4x32xf32> to vector<4x32xf32>
    %60 = arith.addf %57, %59 : vector<4x32xf32>
    %c0_50 = arith.constant 0 : index
    %c5_51 = arith.constant 5 : index
    %c0_52 = arith.constant 0 : index
    %c32_53 = arith.constant 32 : index
    %61 = vector.load %arg2[%c0_50, %c5_51, %c0_52, %c32_53] : memref<1x8x4x64xf32, #tpu.memory_space<vmem>>, vector<1x1x4x32xf32>
    %62 = vector.shape_cast %61 : vector<1x1x4x32xf32> to vector<4x32xf32>
    %63 = arith.addf %60, %62 : vector<4x32xf32>
    %cst_54 = arith.constant 2.500000e-01 : f32
    %64 = vector.broadcast %cst_54 : f32 to vector<4x32xf32>
    %65 = arith.mulf %63, %64 : vector<4x32xf32>
    %66 = arith.mulf %65, %65 : vector<4x32xf32>
    %cst_55 = arith.constant dense<0.000000e+00> : vector<4xf32>
    %67 = vector.multi_reduction <add>, %66, %cst_55 [1] : vector<4x32xf32> to vector<4xf32>
    %68 = vector.shape_cast %67 : vector<4xf32> to vector<4x1xf32>
    %cst_56 = arith.constant 3.200000e+01 : f32
    %69 = vector.broadcast %cst_56 : f32 to vector<4x1xf32>
    %70 = arith.divf %68, %69 : vector<4x1xf32>
    %cst_57 = arith.constant 9.99999997E-7 : f32
    %71 = vector.broadcast %cst_57 : f32 to vector<4x1xf32>
    %72 = arith.addf %70, %71 : vector<4x1xf32>
    %73 = math.rsqrt %72 : vector<4x1xf32>
    %74 = vector.broadcast %73 : vector<4x1xf32> to vector<4x32xf32>
    %75 = arith.mulf %65, %74 : vector<4x32xf32>
    %76 = vector.broadcast %0 : vector<1x32xf32> to vector<4x32xf32>
    %77 = arith.mulf %75, %76 : vector<4x32xf32>
    %c8 = arith.constant 8 : index
    %c0_58 = arith.constant 0 : index
    %78 = vector.load %arg6[%c8, %c0_58] : memref<16x32xf32, #tpu.memory_space<vmem>>, vector<4x32xf32>
    tpu.vector_store %arg6[%c8, %c0_58], %77 {strides = array<i32>} : memref<16x32xf32, #tpu.memory_space<vmem>>, vector<4x32xf32>,
    %c0_59 = arith.constant 0 : index
    %c6 = arith.constant 6 : index
    %c0_60 = arith.constant 0 : index
    %c0_61 = arith.constant 0 : index
    %79 = vector.load %arg2[%c0_59, %c6, %c0_60, %c0_61] : memref<1x8x4x64xf32, #tpu.memory_space<vmem>>, vector<1x1x4x32xf32>
    %80 = vector.shape_cast %79 : vector<1x1x4x32xf32> to vector<4x32xf32>
    %c0_62 = arith.constant 0 : index
    %c6_63 = arith.constant 6 : index
    %c0_64 = arith.constant 0 : index
    %c32_65 = arith.constant 32 : index
    %81 = vector.load %arg2[%c0_62, %c6_63, %c0_64, %c32_65] : memref<1x8x4x64xf32, #tpu.memory_space<vmem>>, vector<1x1x4x32xf32>
    %82 = vector.shape_cast %81 : vector<1x1x4x32xf32> to vector<4x32xf32>
    %83 = arith.addf %80, %82 : vector<4x32xf32>
    %c0_66 = arith.constant 0 : index
    %c7 = arith.constant 7 : index
    %c0_67 = arith.constant 0 : index
    %c0_68 = arith.constant 0 : index
    %84 = vector.load %arg2[%c0_66, %c7, %c0_67, %c0_68] : memref<1x8x4x64xf32, #tpu.memory_space<vmem>>, vector<1x1x4x32xf32>
    %85 = vector.shape_cast %84 : vector<1x1x4x32xf32> to vector<4x32xf32>
    %86 = arith.addf %83, %85 : vector<4x32xf32>
    %c0_69 = arith.constant 0 : index
    %c7_70 = arith.constant 7 : index
    %c0_71 = arith.constant 0 : index
    %c32_72 = arith.constant 32 : index
    %87 = vector.load %arg2[%c0_69, %c7_70, %c0_71, %c32_72] : memref<1x8x4x64xf32, #tpu.memory_space<vmem>>, vector<1x1x4x32xf32>
    %88 = vector.shape_cast %87 : vector<1x1x4x32xf32> to vector<4x32xf32>
    %89 = arith.addf %86, %88 : vector<4x32xf32>
    %cst_73 = arith.constant 2.500000e-01 : f32
    %90 = vector.broadcast %cst_73 : f32 to vector<4x32xf32>
    %91 = arith.mulf %89, %90 : vector<4x32xf32>
    %92 = arith.mulf %91, %91 : vector<4x32xf32>
    %cst_74 = arith.constant dense<0.000000e+00> : vector<4xf32>
    %93 = vector.multi_reduction <add>, %92, %cst_74 [1] : vector<4x32xf32> to vector<4xf32>
    %94 = vector.shape_cast %93 : vector<4xf32> to vector<4x1xf32>
    %cst_75 = arith.constant 3.200000e+01 : f32
    %95 = vector.broadcast %cst_75 : f32 to vector<4x1xf32>
    %96 = arith.divf %94, %95 : vector<4x1xf32>
    %cst_76 = arith.constant 9.99999997E-7 : f32
    %97 = vector.broadcast %cst_76 : f32 to vector<4x1xf32>
    %98 = arith.addf %96, %97 : vector<4x1xf32>
    %99 = math.rsqrt %98 : vector<4x1xf32>
    %100 = vector.broadcast %99 : vector<4x1xf32> to vector<4x32xf32>
    %101 = arith.mulf %91, %100 : vector<4x32xf32>
    %102 = vector.broadcast %0 : vector<1x32xf32> to vector<4x32xf32>
    %103 = arith.mulf %101, %102 : vector<4x32xf32>
    %c12 = arith.constant 12 : index
    %c0_77 = arith.constant 0 : index
    %104 = vector.load %arg6[%c12, %c0_77] : memref<16x32xf32, #tpu.memory_space<vmem>>, vector<4x32xf32>
    tpu.vector_store %arg6[%c12, %c0_77], %103 {strides = array<i32>} : memref<16x32xf32, #tpu.memory_space<vmem>>, vector<4x32xf32>,
    %c0_78 = arith.constant 0 : index
    %c0_79 = arith.constant 0 : index
    %105 = vector.load %arg6[%c0_78, %c0_79] : memref<16x32xf32, #tpu.memory_space<vmem>>, vector<16x32xf32>
    %c0_80 = arith.constant 0 : index
    %c0_81 = arith.constant 0 : index
    %106 = vector.load %arg4[%c0_80, %c0_81] : memref<32x64xf32, #tpu.memory_space<vmem>>, vector<32x64xf32>
    %cst_82 = arith.constant dense<0.000000e+00> : vector<16x64xf32>
    %107 = tpu.matmul %105, %106, %cst_82 {dimension_numbers = #tpu.dot_dimension_numbers<[1], [0], [0], [1], [0, 0, 1, 1], [], []>} : vector<16x32xf32>, vector<32x64xf32>, vector<16x64xf32> -> vector<16x64xf32>
    %c0_83 = arith.constant 0 : index
    %c0_84 = arith.constant 0 : index
    %c0_85 = arith.constant 0 : index
    %108 = vector.load %arg5[%c0_83, %c0_84, %c0_85] : memref<1x16x64xf32, #tpu.memory_space<vmem>>, vector<1x16x64xf32>
    %109 = vector.shape_cast %108 : vector<1x16x64xf32> to vector<16x64xf32>
    %110 = vector.shape_cast %107 : vector<16x64xf32> to vector<1x16x64xf32>
    tpu.vector_store %arg5[%c0_83, %c0_84, %c0_85], %110 {strides = array<i32>} : memref<1x16x64xf32, #tpu.memory_space<vmem>>, vector<1x16x64xf32>,
    return
  }
  func.func @transform_0(%arg0: i32, %arg1: i32) -> (i32, i32, i32, i32) {
    %c0_i32 = arith.constant 0 : i32
    %c0_i32_0 = arith.constant 0 : i32
    %c0_i32_1 = arith.constant 0 : i32
    return %arg0, %arg1, %c0_i32, %c0_i32_0 : i32, i32, i32, i32
  }
  func.func @transform_1(%arg0: i32, %arg1: i32) -> (i32, i32) {
    %c0_i32 = arith.constant 0 : i32
    %c0_i32_0 = arith.constant 0 : i32
    %c0_i32_1 = arith.constant 0 : i32
    return %c0_i32, %c0_i32_0 : i32, i32
  }
  func.func @transform_2(%arg0: i32, %arg1: i32) -> (i32, i32) {
    %c0_i32 = arith.constant 0 : i32
    %c0_i32_0 = arith.constant 0 : i32
    %c0_i32_1 = arith.constant 0 : i32
    return %c0_i32, %c0_i32_0 : i32, i32
  }
  func.func @transform_3(%arg0: i32, %arg1: i32) -> (i32, i32, i32) {
    %c0_i32 = arith.constant 0 : i32
    %c0_i32_0 = arith.constant 0 : i32
    return %arg0, %arg1, %c0_i32 : i32, i32, i32
  }
}

</mosaic_0001>

<bundles_post_ra>
// kernel: tpu_custom_call.1
= control target key start
LH: loop header
LB: loop body
LE: loop exit
PB: predicated region body
PF: predicated region fallthrough
CT: control target
= control target key end

     0   :  { %s1083_s0 = inlined_call_operand.hbm [shape: f32[2,8,4,64], index: 0, kind: input, shape index: {}]   ;;  %s1084_s1 = inlined_call_operand.hbm [shape: f32[1,32], index: 1, kind: input, shape index: {}]   ;;  %s1085_s2 = inlined_call_operand.hbm [shape: f32[32,64], index: 2, kind: input, shape index: {}]   ;;  %s1086_s3 = inlined_call_operand.hbm [shape: f32[2,16,64], index: 3, kind: output, shape index: {}]  }
   0x1   :  { %1087 = sst [smem:[#allocation13_spill]] %s1084_s1 }
   0x2   :  { %8 = vsyncpa [#allocation4], 0 }
   0x3   :  { %10 = vsyncpa [#allocation4 + $0x1], 0 }
   0x4   :  { %11 = vsyncpa [#allocation7], 0 }
   0x5   :  { %12 = vsyncpa [#allocation5], 0 }
   0x6   :  { %14 = vsyncpa [#allocation5 + $0x1], 0  ;;  %s900_s12 = smov 0   ;;  %s902_s13 = smov 0  }
   0x7   :  { %s904_s14 = smov 0   ;;  %s906_s15 = smov 0  }
   0x8   :  { %s908_s16 = smov 0   ;;  %s910_s17 = smov 0  }
   0x9 LB: > { %s556_s18 = sadd.s32 4294967295, %s868_s17   ;;  %s557_s19 = sadd.s32 4294967294, %s868_s17   ;;  %s868_s17 = sphi %s910_s17, %s20_s17   ;;  %s864_s16 = sphi %s908_s16, %s1101_s16   ;;  %s860_s15 = sphi %s906_s15, %s1100_s15   ;;  %s856_s14 = sphi %s904_s14, %s1099_s14   ;;  %s852_s13 = sphi %s902_s13, %s1098_s13   ;;  %s848_s12 = sphi %s900_s12, %s1097_s12  }
   0xa   : > { %p48_p0 = scmp.ne.s32.totalorder %s856_s14, %s852_s13  ;;  %p49_p1 = scmp.eq.s32.totalorder %s868_s17, 0 }
   0xb   : > { %p54_p2 = scmp.ne.s32.totalorder %s852_s13, %s848_s12  ;;  %p938_p3 = scmp.eq.s32.totalorder %s556_s18, 0 }
   0xc   : > { %p122_p4 = scmp.eq.s32.totalorder %s556_s18, 1  ;;  %p942_p5 = por %p49_p1, %p48_p0 }
   0xd   : > { %p128_p6 = scmp.eq.s32.totalorder %s557_s19, 1  ;;  %p948_p7 = por %p938_p3, %p54_p2 }
   0xe   : > { %p952_p8 = por %p122_p4, %p48_p0  ;;  %p558_p10 = scmp.ge.s32.totalorder %s868_s17, 1 }
   0xf   : > { %p956_p9 = por %p128_p6, %p54_p2  ;;  %p135_p11 = scmp.lt.s32.totalorder %s868_s17, 3 }
  0x10   : > { %s1093_s1 = sld [smem:[#allocation13_spill]]  ;;  %s870_s30 = smov [#allocation6]  }
  0x11   : > { %p965_p12 = pnand %p558_p10, %p135_p11  ;;  %s149_s4 = sshll.u32 %s870_s30, 4  ;;  %s150_s4 = int_to_ptr.vmem [resolvable:$true] %s149_s4 }
  0x12   : > { %p561_p13 = scmp.ge.s32.totalorder %s868_s17, 2  ;;  %p619_p1 = scmp.lt.s32.totalorder %s868_s17, 2 }
  0x13   : > { %p602_p0 = pneg %p965_p12  ;;  %s158_s7 = sshll.u32 %s1085_s2, 4  ;;  %s159_s7 = int_to_ptr.hbm [resolvable:$true] %s158_s7 }
  0x14   : > { %p980_p4 = pnand %p619_p1, %p942_p5  ;;  %s871_s9 = smov [#allocation8]  }
  0x15   : > { %p603_p2 = pnand %p602_p0, %p938_p3  ;;  %s160_s10 = sshll.u32 %s871_s9, 4  ;;  %s161_s10 = int_to_ptr.vmem [resolvable:$true] %s160_s10 }
  0x16   : > { %s147_s28 = sshll.u32 %s1093_s1, 4  ;;  %s872_s11 = smov 128   ;;  %s148_s28 = int_to_ptr.hbm [resolvable:$true] %s147_s28 }
  0x17   : > { %605 = dma.hbm_to_vmem [thread:$0]  (!%p603_p2), %s148_s28, 16, %s150_s4, [#allocation7]  }
  0x18   : > { %s873_s18 = smov 8   ;;  %s174_s19 = sand.u32 1, %s856_s14  }
  0x19   : > { %608 = dma.hbm_to_vmem [thread:$0]  (!%p603_p2), %s159_s7, 512, %s161_s10, [#allocation7], %s872_s11, %s872_s11, %s873_s18  }
  0x1a   : > { %s32_s26 = sadd.s32 1, %s864_s16  ;;  %s562_s27 = sshll.u32 %s174_s19, 5 }
  0x1b   : > { %p34_p6 = scmp.ge.s32.totalorder %s32_s26, 2  ;;  %s584_s22 = sshll.u32 %s864_s16, 5 }
  0x1c   : > { %s178_s30 = scalar_lea.vmem [#allocation3], %s562_s27  ;;  %s185_s28 = scalar_lea.hbm %s1083_s0, %s584_s22 }
  0x1d   : > { %s188_s5 = sshll.u32 %s178_s30, 4  ;;  %s1103_s26 = smov (%p34_p6, %s32_s26), 0  ;;  %s189_s5 = int_to_ptr.vmem [resolvable:$true] %s188_s5 }
  0x1e   : > { %s36_s4 = ssub.s32 %s864_s16, %s1103_s26  ;;  %s186_s20 = sshll.u32 %s185_s28, 4  ;;  %s187_s20 = int_to_ptr.hbm [resolvable:$true] %s186_s20 }
  0x1f   : > { %p39_p5 = scmp.eq.s32.totalorder %s36_s4, 0  ;;  %s1096_s7 = sadd.s32 1, %s856_s14 }
  0x20   : > { %s175_s11 = scalar_lea.sflag [#allocation4], %s174_s19  ;;  %s874_s18 = smov 64  }
  0x21   : > { %s997_s10 = scalar_select %p39_p5, %s856_s14, %s1096_s7  }
  0x22   : > { %s875_s1 = smov 4   ;;  %200 = sbr.rel (%p965_p12) target bundleno = 463 (0x1cf), region = 32 }
  0x23   : > { %612 = dma.hbm_to_vmem [thread:$0]  (!%p980_p4), %s187_s20, 512, %s189_s5, %s175_s11, %s874_s18, %s874_s18, %s875_s1  }
  0x24   : > { %s1004_s27 = sand.u32 (!%p965_p12), 1, %s852_s13  }
  0x25   : > { %s566_s22 = sshll.u32 (!%p965_p12), %s1004_s27, 5  ;;  %s203_s30 = scalar_lea.sflag (!%p965_p12), [#allocation4], %s1004_s27 }
  0x26   : > { %s206_s6 = scalar_lea.vmem (!%p965_p12), [#allocation3], %s566_s22 }
  0x27   : > { %835 = dma.done.wait (%p948_p7), %s203_s30, 512  }
  0x28   : > { %837 = vsyncadd (%p948_p7), %s203_s30, 4294966784 }
  0x29   : > { %839 = dma.done.wait (%p938_p3), [#allocation7], 528  }
  0x2a   : > { %841 = vsyncadd (%p938_p3), [#allocation7], 4294966768  ;;  %v573_v0 = vld [vmem:[%s206_s6 + $0x10] sm:$0xf]  ;;  %v243_v1 = vld [vmem:[%s206_s6] sm:$0xf] }
  0x2b   : > { %s876_s1 = smov 96   ;;  %v570_v2 = vld [vmem:[%s206_s6 + $0x4] sm:$0xf]  ;;  %v575_v3 = vld [vmem:[%s206_s6 + $0x18] sm:$0xf]  ;;  %vm259_vm0 = vcmask 257024  }
  0x2c   : > { %326 = vrot.lane.b32.xlu1 %v573_v0, %s876_s1  ;;  %245 = vrot.lane.b32.xlu0 %v243_v1, %s876_s1  ;;  %v571_v4 = vld [vmem:[%s206_s6 + $0x8] sm:$0xf]  ;;  %v572_v5 = vld [vmem:[%s206_s6 + $0xc] sm:$0xf]  ;;  %v877_v40 = vmov 32.0   ;;  %v398_v50 = vld [vmem:[#allocation8 + $0x18] sm:$0xff] }
  0x2d   : > { %253 = vrot.lane.b32.xlu2 %v570_v2, %s876_s1  ;;  %v576_v6 = vld [vmem:[%s206_s6 + $0x1c] sm:$0xf]  ;;  %v574_v7 = vld [vmem:[%s206_s6 + $0x14] sm:$0xf]  ;;  %682 = vrcp.f32 %v877_v40  ;;  %418 = vmatpush.msra.mxu0 %v398_v50  ;;  %v396_v53 = vld [vmem:[#allocation8 + $0x8] sm:$0xff]  ;;  %vm399_vm14 = vcmask 261120  }
  0x2e   : > { %586 = vmatpush.msra.mxu1 %v398_v50  ;;  %v397_v51 = vld [vmem:[#allocation8 + $0x10] sm:$0xff]  ;;  %v395_v54 = vld [vmem:[#allocation8] sm:$0xff]  ;;  %s585_s20 = sshll.u32 %s860_s15, 4  ;;  %s569_s21 = sshll.u32 %s1004_s27, 4  ;;  %vm429_vm15 = vcmask 523264  }
  0x2f   : > { %419 = vmatpush.msra.mxu0 %v397_v51  ;;  %s446_s8 = scalar_lea.hbm %s1086_s3, %s585_s20  ;;  %s239_s19 = scalar_lea.vmem [#allocation9], %s569_s21 }
  0x30   : > { %587 = vmatpush.msra.mxu1 %v397_v51  ;;  %s447_s5 = sshll.u32 %s239_s19, 4  ;;  %s449_s9 = sshll.u32 %s446_s8, 4  ;;  %s448_s5 = int_to_ptr.vmem [resolvable:$true] %s447_s5  ;;  %s450_s9 = int_to_ptr.hbm [resolvable:$true] %s449_s9 }
  0x31   : > { %420 = vmatpush.msra.mxu0 %v396_v53  ;;  %s433_s28 = scalar_lea.sflag [#allocation5], %s1004_s27  ;;  %s796_s4 = sshra.s32 %s450_s9, 4  ;;  %s797_s4 = int_to_ptr.hbm [resolvable:$true] %s796_s4 }
  0x32   : > { %588 = vmatpush.msra.mxu1 %v396_v53  ;;  %s798_s15 = scalar_lea.hbm %s797_s4, 16  ;;  %s802_s18 = scalar_lea.hbm %s1086_s3, 32 }
  0x33   : > { %v683_v41 = vpop.eup %682  ;;  %421 = vmatpush.msra.mxu0 %v395_v54  ;;  %p799_p3 = scmp.ne.s32.totalorder %s797_s4, %s798_s15  ;;  %p803_p11 = scmp.lt.s32.totalorder %s797_s4, %s1086_s3 }
  0x34   : > { %361 = vrot.lane.b32.xlu1 %v575_v3, %s876_s1  ;;  %291 = vrot.lane.b32.xlu0 %v571_v4, %s876_s1  ;;  %v264_v42 = vmul.f32 32.0, %v683_v41  ;;  %vm268_vm1 = vweird.f32 %v683_v41  ;;  %p804_p12 = scmp.lt.s32.totalorder %s802_s18, %s798_s15 }
  0x35   : > { %299 = vrot.lane.b32.xlu2 %v572_v5, %s876_s1  ;;  %589 = vmatpush.msra.mxu1 %v395_v54  ;;  %p800_p7 = pnand %p799_p3, %p952_p8 }
  0x36   : > { %v265_v43 = vsub.f32 1.0, %v264_v42  ;;  %p805_p0 = por %p804_p12, %p803_p11 }
  0x37   : > { %p801_p10 = pneg %p800_p7 }
  0x38   : > { %v266_v44 = vmul.f32 %v683_v41, %v265_v43 }
  0x39   : > { %p806_p1 = pnand %p805_p0, %p801_p10 }
  0x3a   : > { %v267_v45 = vadd.f32 %v683_v41, %v266_v44 }
  0x3c   : > { %369 = vrot.lane.b32.xlu1 %v576_v6, %s876_s1  ;;  %334 = vrot.lane.b32.xlu0 %v574_v7, %s876_s1  ;;  %v269_v46 = vsel %vm268_vm1, %v683_v41, %v267_v45 }
  0x87   : > { %v254_v8 = vpop.permute.xlu2 %253 }
  0x8f   : > { %v300_v19 = vpop.permute.xlu2 %299 }
  0x9e   : > { %v327_v9 = vpop.permute.xlu1 %326  ;;  %v246_v10 = vpop.permute.xlu0 %245 }
  0x9f   : > { %v248_v11 = vadd.f32 %v246_v10, %v243_v1  ;;  %v329_v20 = vadd.f32 %v573_v0, %v327_v9 }
  0xa1   : > { %v251_v12 = vadd.f32 %v570_v2, %v248_v11  ;;  %v332_v27 = vadd.f32 %v574_v7, %v329_v20  ;;  %v681_v7 = vld [vmem:[#allocation6] ss:$0 sm:$0xff] }
  0xa3   : > { %v256_v13 = vadd.f32 %v254_v8, %v251_v12 }
  0xa5   : > { %v1016_v14 = vmul.f32 0.25, %v256_v13 }
  0xa6   : > { %v362_v15 = vpop.permute.xlu1 %361  ;;  %v292_v16 = vpop.permute.xlu0 %291 }
  0xa7   : > { %v294_v17 = vadd.f32 %v571_v4, %v292_v16  ;;  %v258_v18 = vmul.f32 %v1016_v14, %v1016_v14  ;;  %v364_v21 = vadd.f32 %v575_v3, %v362_v15 }
  0xa9   : > { %v297_v22 = vadd.f32 %v572_v5, %v294_v17  ;;  %v260_v23 = vsel %vm259_vm0, %v258_v18, 0.0  ;;  %v367_v26 = vadd.f32 %v576_v6, %v364_v21 }
  0xaa   : > { %261 = vadd.xlane.f32.xlu2 %v260_v23 }
  0xab   : > { %v302_v24 = vadd.f32 %v300_v19, %v297_v22 }
  0xad   : > { %v1021_v25 = vmul.f32 0.25, %v302_v24 }
  0xae   : > { %v370_v28 = vpop.permute.xlu1 %369  ;;  %v335_v29 = vpop.permute.xlu0 %334 }
  0xaf   : > { %v372_v30 = vadd.f32 %v370_v28, %v367_v26  ;;  %v337_v31 = vadd.f32 %v335_v29, %v332_v27  ;;  %v304_v32 = vmul.f32 %v1021_v25, %v1021_v25 }
  0xb1   : > { %v1025_v33 = vmul.f32 0.25, %v372_v30  ;;  %v1027_v34 = vmul.f32 0.25, %v337_v31  ;;  %v305_v35 = vsel %vm259_vm0, %v304_v32, 0.0 }
  0xb2   : > { %306 = vadd.xlane.f32.xlu0 %v305_v35 }
  0xb3   : > { %v374_v36 = vmul.f32 %v1025_v33, %v1025_v33  ;;  %v339_v37 = vmul.f32 %v1027_v34, %v1027_v34 }
  0xb5   : > { %v375_v38 = vsel %vm259_vm0, %v374_v36, 0.0  ;;  %v340_v39 = vsel %vm259_vm0, %v339_v37, 0.0 }
  0xb6   : > { %376 = vadd.xlane.f32.xlu2 %v375_v38  ;;  %341 = vadd.xlane.f32.xlu1 %v340_v39 }
 0x11d   : > { %v262_v47 = vpop.xlane.xlu2 %261 }
 0x11e   : > { %v270_v48 = vmul.f32 %v269_v46, %v262_v47 }
 0x120   : > { %v271_v49 = vadd.f32 1e-06, %v270_v48 }
 0x122   : > { %684 = vrsqrt.f32 %v271_v49  ;;  %vm278_vm3 = vweird.f32 %v271_v49 }
 0x125   : > { %v307_v52 = vpop.xlane.xlu0 %306 }
 0x126   : > { %v308_v55 = vmul.f32 %v307_v52, %v269_v46 }
 0x128   : > { %v685_v56 = vpop.eup %684  ;;  %v309_v57 = vadd.f32 1e-06, %v308_v55 }
 0x129   : > { %v273_v58 = vmul.f32 %v685_v56, %v271_v49  ;;  %v377_v59 = vpop.xlane.xlu2 %376  ;;  %v342_v60 = vpop.xlane.xlu1 %341  ;;  %vm279_vm2 = vweird.f32 %v685_v56 }
 0x12a   : > { %686 = vrsqrt.f32 %v309_v57  ;;  %v378_v61 = vmul.f32 %v377_v59, %v269_v46  ;;  %v343_v62 = vmul.f32 %v342_v60, %v269_v46  ;;  %vm280_vm4 = vmor %vm278_vm3, %vm279_vm2  ;;  %vm316_vm6 = vweird.f32 %v309_v57 }
 0x12b   : > { %v274_v63 = vmul.f32 %v685_v56, %v273_v58 }
 0x12c   : > { %v379_v0 = vadd.f32 1e-06, %v378_v61  ;;  %v344_v1 = vadd.f32 1e-06, %v343_v62 }
 0x12d   : > { %v275_v2 = vmul.f32 0.5, %v274_v63 }
 0x12e   : > { %688 = vrsqrt.f32 %v379_v0  ;;  %vm386_vm10 = vweird.f32 %v379_v0  ;;  %vm351_vm12 = vweird.f32 %v344_v1 }
 0x12f   : > { %v276_v3 = vsub.f32 1.5, %v275_v2  ;;  %690 = vrsqrt.f32 %v344_v1 }
 0x130   : > { %v687_v4 = vpop.eup %686 }
 0x131   : > { %v277_v5 = vmul.f32 %v685_v56, %v276_v3  ;;  %v311_v6 = vmul.f32 %v687_v4, %v309_v57  ;;  %vm317_vm5 = vweird.f32 %v687_v4 }
 0x132   : > { %vm318_vm7 = vmor %vm316_vm6, %vm317_vm5 }
 0x133   : > { %v281_v8 = vsel %vm280_vm4, %v685_v56, %v277_v5  ;;  %v312_v9 = vmul.f32 %v687_v4, %v311_v6 }
 0x134   : > { %v689_v10 = vpop.eup %688  ;;  %v282_v11 = vmul.f32 %v281_v8, %v1016_v14 }
 0x135   : > { %v691_v12 = vpop.eup %690  ;;  %v313_v13 = vmul.f32 0.5, %v312_v9  ;;  %v381_v15 = vmul.f32 %v689_v10, %v379_v0  ;;  %vm387_vm8 = vweird.f32 %v689_v10 }
 0x136   : > { %v286_v16 = vmul.f32 %v681_v7, %v282_v11  ;;  %v346_v17 = vmul.f32 %v691_v12, %v344_v1  ;;  %vm352_vm9 = vweird.f32 %v691_v12  ;;  %vm388_vm11 = vmor %vm386_vm10, %vm387_vm8 }
 0x137   : > { %v314_v18 = vsub.f32 1.5, %v313_v13  ;;  %v382_v19 = vmul.f32 %v689_v10, %v381_v15  ;;  %vm353_vm13 = vmor %vm351_vm12, %vm352_vm9 }
 0x138   : > { %287 = vst.msk [vmem:[#allocation2] sm:$0xf] %vm259_vm0, %v286_v16  ;;  %v347_v20 = vmul.f32 %v691_v12, %v346_v17 }
 0x139   : > { %v315_v21 = vmul.f32 %v687_v4, %v314_v18  ;;  %v383_v22 = vmul.f32 0.5, %v382_v19 }
 0x13a   : > { %v348_v23 = vmul.f32 0.5, %v347_v20 }
 0x13b   : > { %v319_v24 = vsel %vm318_vm7, %v687_v4, %v315_v21  ;;  %v384_v26 = vsub.f32 1.5, %v383_v22 }
 0x13c   : > { %v320_v14 = vmul.f32 %v319_v24, %v1021_v25  ;;  %v349_v27 = vsub.f32 1.5, %v348_v23 }
 0x13d   : > { %v385_v28 = vmul.f32 %v689_v10, %v384_v26 }
 0x13e   : > { %v321_v29 = vmul.f32 %v681_v7, %v320_v14  ;;  %v350_v30 = vmul.f32 %v691_v12, %v349_v27 }
 0x13f   : > { %v389_v31 = vsel %vm388_vm11, %v689_v10, %v385_v28 }
 0x140   : > { %322 = vst.msk [vmem:[#allocation2 + $0x4] sm:$0xf] %vm259_vm0, %v321_v29  ;;  %v390_v32 = vmul.f32 %v389_v31, %v1025_v33  ;;  %v354_v35 = vsel %vm353_vm13, %v691_v12, %v350_v30 }
 0x141   : > { %v355_v36 = vmul.f32 %v354_v35, %v1027_v34 }
 0x142   : > { %v391_v25 = vmul.f32 %v681_v7, %v390_v32 }
 0x143   : > { %v356_v37 = vmul.f32 %v681_v7, %v355_v36 }
 0x144   : > { %392 = vst.msk [vmem:[#allocation2 + $0xc] sm:$0xf] %vm259_vm0, %v391_v25 }
 0x145   : > { %357 = vst.msk [vmem:[#allocation2 + $0x8] sm:$0xf] %vm259_vm0, %v356_v37 }
 0x147   : > { %v393_v38 = vld [vmem:[#allocation2] sm:$0xff] }
 0x148   : > { %577 = vmatmul.msk.f32.vlgmr.msra.gmra.mxu0 %vm399_vm14, %v393_v38 }
 0x14c   : > { %v394_v39 = vld [vmem:[#allocation2 + $0x8] sm:$0xff] }
 0x14d   : > { %578 = vmatmul.msk.f32.vlgmr.msra.gmra.mxu1 %vm399_vm14, %v394_v39 }
 0x1c5   : > { %v423_v33 = vpop.f32.mrf.mxu0 }
 0x1c6   : > { %430 = vst.msk [vmem:[%s239_s19] sm:$0xff] %vm429_vm15, %v423_v33 }
 0x1ca   : > { %v426_v34 = vpop.f32.mrf.mxu1 }
 0x1cb   : > { %431 = vst.msk [vmem:[%s239_s19 + $0x8] sm:$0xff] %vm429_vm15, %v426_v34 }
 0x1cc   : > { %809 = shalt.err (!%p806_p1)
}
 0x1cd   : > { %s878_s27 = smov 128   ;;  %s879_s6 = smov 8  }
 0x1ce   : > { %600 = dma.vmem_to_hbm [thread:$0]  (%p952_p8), %s448_s5, 256, %s450_s9, %s433_s28, %s878_s27, %s878_s27, %s879_s6  }
 0x1cf PF: > { %s464_s1 = sand.u32 1, %s848_s12   ;;  %p614_p2 = pnand %p561_p13, %p956_p9 }
 0x1d0   : > { %s465_s20 = scalar_lea.sflag [#allocation5], %s464_s1 }
 0x1d1   : > { %p615_p4 = pneg %p614_p2 }
 0x1d3   : > { %843 = dma.done.wait (%p615_p4), %s465_s20, 256  }
 0x1d4   : > { %845 = vsyncadd (%p615_p4), %s465_s20, 4294967040  ;;  %s20_s17 = sadd.s32 1, %s868_s17   ;;  %s1097_s12 = smov %s852_s13 }
 0x1d5   : > { %p17_p6 = scmp.ge.s32.totalorder %s20_s17, 4   ;;  %s1098_s13 = smov %s856_s14 }
 0x1d6   : > { %s1099_s14 = smov %s997_s10  ;;  %s1100_s15 = smov %s864_s16 }
 0x1d7   : > { %s1101_s16 = smov %s1103_s26  ;;  %19 = sbr.rel (!%p17_p6) target bundleno = 9 (0x9), region = 92 }
 0x1dc   :  { %471 = vsyncpa [#allocation4], 1 }
 0x1dd   :  { %473 = vsyncpa [#allocation4 + $0x1], 1 }
 0x1de   :  { %474 = vsyncpa [#allocation7], 1 }
 0x1df   :  { %475 = vsyncpa [#allocation5], 1 }
 0x1e0   :  { %477 = vsyncpa [#allocation5 + $0x1], 1 }

</bundles_post_ra>
